<compile_context>
chip_gen: v6e
topology: v6e:2x2x1
jax: 0.10.0
libtpu: 0.0.40
codegen_flags: <defaults>
</compile_context>

<pallas_src>
import jax
import jax.numpy as jnp
from jax.experimental import pallas as pl
from jax.experimental.pallas import tpu as pltpu


# Only bother splitting the copy into multiple outstanding DMAs when the
# array is at least this big; below that a single descriptor is optimal.
_CHUNK_THRESHOLD_BYTES = 4 * 1024 * 1024
_MAX_OUTSTANDING_DMAS = 4


def _build_copy_kernel(chunks):
    """Build an HBM->HBM DMA copy kernel.

    chunks: tuple of (start, size) static slices along axis 0, or None to copy
    the whole array with a single DMA.
    Returns (kernel_fn, num_semaphores).
    """
    n_sems = len(chunks) if chunks else 1

    def kernel(x_ref, o_ref, sems):
        copies = []
        if chunks:
            for c, (start, size) in enumerate(chunks):
                copies.append(
                    pltpu.make_async_copy(
                        x_ref.at[pl.ds(start, size)],
                        o_ref.at[pl.ds(start, size)],
                        sems.at[c],
                    )
                )
        else:
            copies.append(pltpu.make_async_copy(x_ref, o_ref, sems.at[0]))
        # Start every DMA first so they overlap, then wait on all of them.
        for cp in copies:
            cp.start()
        for cp in copies:
            cp.wait()

    return kernel, n_sems


def identity(x: jax.Array, *, materialize_copy: bool = True) -> jax.Array:
    """Pallas implementation of nn.Identity forward: returns input unchanged.

    With materialize_copy=False this is the zero-cost path (`return x`);
    with the default True it materializes the result via a single
    Pallas-issued HBM->HBM DMA copy (the cheapest possible kernel form).
    """
    if not materialize_copy or x.size == 0:
        return x

    nbytes = x.size * x.dtype.itemsize

    # For large arrays, split the copy along the leading axis into a few
    # outstanding DMAs (static slices, computed at trace time).
    chunks = None
    if x.ndim >= 1 and x.shape[0] >= 2 and nbytes >= _CHUNK_THRESHOLD_BYTES:
        lead = x.shape[0]
        n = min(_MAX_OUTSTANDING_DMAS, lead)
        rows = -(-lead // n)  # ceil division, static python int
        chunks = tuple(
            (start, min(rows, lead - start)) for start in range(0, lead, rows)
        )

    kernel, n_sems = _build_copy_kernel(chunks)

    return pl.pallas_call(
        kernel,
        out_shape=jax.ShapeDtypeStruct(x.shape, x.dtype),
        in_specs=[pl.BlockSpec(memory_space=pl.ANY)],
        out_specs=pl.BlockSpec(memory_space=pl.ANY),
        scratch_shapes=[pltpu.SemaphoreType.DMA((n_sems,))],
        cost_estimate=pl.CostEstimate(
            flops=0,
            transcendentals=0,
            bytes_accessed=2 * nbytes,  # pure memory traffic: read + write
        ),
    )(x)


if __name__ == "__main__":
    key = jax.random.PRNGKey(0)
    # Small NCHW input consistent with an ImageNet-style conv feature map.
    x = jax.random.normal(key, (2, 4, 16, 16), dtype=jnp.float32)

    y = identity(x)
    jax.block_until_ready(y)

    assert y.shape == x.shape
    assert y.dtype == x.dtype
    assert bool(jnp.array_equal(y, x))

    print("KERNEL_OK")
</pallas_src>

<mosaic_0001>
module attributes {stable_mosaic.version = 11 : i64} {
  func.func @kernel(%arg0: memref<2x4x16x16xf32, #tpu.memory_space<any>>, %arg1: memref<2x4x16x16xf32, #tpu.memory_space<any>>, %arg2: memref<1x!tpu.dma_semaphore, #tpu.memory_space<semaphore_mem>>) attributes {dimension_semantics = [], scalar_prefetch = 0 : i64, scratch_operands = 1 : i64, tpu.core_type = #tpu.core_type<tc>} {
    %c0_i32 = arith.constant 0 : i32
    %0 = tpu.memref_slice %arg2[%c0_i32] : memref<1x!tpu.dma_semaphore, #tpu.memory_space<semaphore_mem>> -> memref<1x!tpu.dma_semaphore, #tpu.memory_space<semaphore_mem>>
    %1 = tpu.memref_squeeze %0 : memref<1x!tpu.dma_semaphore, #tpu.memory_space<semaphore_mem>> -> memref<!tpu.dma_semaphore, #tpu.memory_space<semaphore_mem>>
    tpu.enqueue_dma source(%arg0 : memref<2x4x16x16xf32, #tpu.memory_space<any>>) target(%arg1 : memref<2x4x16x16xf32, #tpu.memory_space<any>>) target_semaphore(%1 : memref<!tpu.dma_semaphore, #tpu.memory_space<semaphore_mem>>)
    %c0_i32_0 = arith.constant 0 : i32
    %2 = tpu.memref_slice %arg2[%c0_i32_0] : memref<1x!tpu.dma_semaphore, #tpu.memory_space<semaphore_mem>> -> memref<1x!tpu.dma_semaphore, #tpu.memory_space<semaphore_mem>>
    %3 = tpu.memref_squeeze %2 : memref<1x!tpu.dma_semaphore, #tpu.memory_space<semaphore_mem>> -> memref<!tpu.dma_semaphore, #tpu.memory_space<semaphore_mem>>
    tpu.wait_dma2 semaphore(%3 : memref<!tpu.dma_semaphore, #tpu.memory_space<semaphore_mem>>) src(%arg0 : memref<2x4x16x16xf32, #tpu.memory_space<any>>) dst(%arg1 : memref<2x4x16x16xf32, #tpu.memory_space<any>>)
    return
  }
}

</mosaic_0001>

<bundles_post_ra>
// kernel: tpu_custom_call.1
= control target key start
LH: loop header
LB: loop body
LE: loop exit
PB: predicated region body
PF: predicated region fallthrough
CT: control target
= control target key end

     0   :  { %s30_s6 = smov [#allocation2]   ;;  %s31_s7 = smov 131072   ;;  %s49_s0 = inlined_call_operand.hbm [shape: f32[2,4,16,16], index: 0, kind: input, shape index: {}]   ;;  %s50_s1 = inlined_call_operand.hbm [shape: f32[2,4,16,16], index: 1, kind: output, shape index: {}]  }
   0x1   :  { %s32_s8 = smov 0  }
   0x2   :  { %12 = dma.general %s49_s0, 2048, %s50_s1, %s30_s6, %s31_s7, [#allocation4], %s32_s8, 0  }
   0x3   :  { %28 = dma.done.wait [#allocation2], 2048 }
   0x4   :  { %29 = vsyncadd [#allocation2], 4294965248 }
   0x5   :  { %18 = vsyncmov [#allocation2] }
   0x8   :  { %s19_s13 = vpop.sfrf %18 }
   0x9   :  { %p24_p0 = scmp.ne.s32.totalorder %s19_s13, 0 }
   0xb   :  { %23 = shalt.err (%p24_p0)  }

</bundles_post_ra>
